<compile_context>
chip_gen: v5e
topology: v5e:2x2
jax: 0.10.0
libtpu: 0.0.40
codegen_flags: <defaults>
</compile_context>

<pallas_src>
import functools

import jax
import jax.numpy as jnp
from jax.experimental import pallas as pl
from jax.experimental.pallas import tpu as pltpu


def _round_up(x, m):
    return (x + m - 1) // m * m


def _pad2d(a, rows, cols):
    pr, pc = rows - a.shape[0], cols - a.shape[1]
    if pr == 0 and pc == 0:
        return a
    return jnp.pad(a, ((0, pr), (0, pc)))


def mlp_kernel(x_ref, w1_ref, b1_ref, w2_ref, b2_ref, o_ref, acc_ref,
               *, approximate_gelu):
    # Grid = (row tiles [parallel], hidden chunks [arbitrary, reduction]).
    # x_ref:  (tm, dim_p)        w1_ref: (dim_p, tk)   b1_ref: (1, tk)  f32
    # w2_ref: (tk, dim_p)        b2_ref: (1, dim_p)    f32
    # o_ref:  (tm, dim_p)        acc_ref: (tm, dim_p)  f32 scratch
    k = pl.program_id(1)

    @pl.when(k == 0)
    def _():
        acc_ref[...] = jnp.zeros_like(acc_ref)

    # fc1 chunk: native-dtype operands, f32 accumulation on the MXU.
    h = jnp.dot(x_ref[...], w1_ref[...], preferred_element_type=jnp.float32)
    h = h + b1_ref[...]

    # GELU is elementwise over hidden, so chunking is exact.
    # approximate=True -> tanh/exp form (EUP path, cheap); False -> erf form
    # matching torch.nn.GELU()'s default (VALU polynomial, slower).
    h = jax.nn.gelu(h, approximate=approximate_gelu)

    # TODO(synk): dropout is identity here (inference mode); training-mode dropout
    # would use pltpu.prng_seed / pltpu.stateful_bernoulli.

    # fc2 chunk: cast activations to the weight dtype, accumulate f32 partials.
    h = h.astype(w2_ref.dtype)
    acc_ref[...] += jnp.dot(h, w2_ref[...], preferred_element_type=jnp.float32)

    @pl.when(k == pl.num_programs(1) - 1)
    def _():
        o_ref[...] = (acc_ref[...] + b2_ref[...]).astype(o_ref.dtype)


@functools.partial(
    jax.jit, static_argnames=("tm", "tk", "approximate_gelu", "compute_dtype"))
def _mlp_impl(x, w1, b1, w2, b2, *, tm, tk, approximate_gelu, compute_dtype):
    B, N, dim = x.shape
    hidden = w1.shape[1]
    rows = B * N
    out_dtype = x.dtype

    # Optional bf16 compute path (biases stay f32, output stays in out_dtype).
    if compute_dtype is not None:
        x = x.astype(compute_dtype)
        w1 = w1.astype(compute_dtype)
        w2 = w2.astype(compute_dtype)

    # Lane-dense feature axes (multiples of 128).
    dim_p = _round_up(dim, 128)

    # Hidden chunk: multiple of 128, clamped; hidden padded up to a chunk multiple.
    tk_eff = max(128, min(_round_up(tk, 128), _round_up(hidden, 128)))
    hid_p = _round_up(hidden, tk_eff)

    # Row tile: multiple of 16 sublanes, clamped to the problem size.
    tm_eff = _round_up(min(tm, _round_up(rows, 16)), 16)
    rows_p = _round_up(rows, tm_eff)

    # For standard ViT dims (dim/hidden multiples of 128) the feature pads are no-ops
    # and _pad2d skips the copy entirely; pre-pad weights outside the call path if
    # the dims are exotic and the call is hot.
    x2d = _pad2d(x.reshape(rows, dim), rows_p, dim_p)
    w1p = _pad2d(w1, dim_p, hid_p)
    w2p = _pad2d(w2, hid_p, dim_p)
    # Biases pre-cast to f32 and pre-shaped (1, F): added straight to the f32 acc.
    b1p = _pad2d(b1.astype(jnp.float32).reshape(1, hidden), 1, hid_p)
    b2p = _pad2d(b2.astype(jnp.float32).reshape(1, dim), 1, dim_p)

    grid = (rows_p // tm_eff, hid_p // tk_eff)

    # VMEM budget from actual buffer sizes (double-buffered pipelined operands +
    # the resident f32 accumulator + live intermediate), with headroom for Mosaic
    # internal scratch.  Capped at 96 MiB (fits v5e/v6e; small enough footprint
    # that v7x's 64 MiB/TC is never approached with streamed weights).
    xsz = x2d.dtype.itemsize
    wsz = w1p.dtype.itemsize
    osz = jnp.dtype(out_dtype).itemsize
    buf_bytes = (
        2 * tm_eff * dim_p * xsz          # x tiles (double-buffered)
        + 2 * dim_p * tk_eff * wsz        # w1 chunks
        + 2 * tk_eff * dim_p * wsz        # w2 chunks
        + 2 * 8 * tk_eff * 4              # b1 chunks (sublane-padded)
        + 2 * 8 * dim_p * 4               # b2
        + 2 * tm_eff * dim_p * osz        # out tiles
        + tm_eff * dim_p * 4              # f32 accumulator scratch
        + tm_eff * tk_eff * 4             # live fc1/GELU intermediate
    )
    vmem_limit = min(max(int(buf_bytes * 1.5) + (8 << 20), 32 << 20), 96 << 20)

    kernel = functools.partial(mlp_kernel, approximate_gelu=approximate_gelu)

    out2d = pl.pallas_call(
        kernel,
        out_shape=jax.ShapeDtypeStruct((rows_p, dim_p), out_dtype),
        grid_spec=pltpu.PrefetchScalarGridSpec(
            num_scalar_prefetch=0,
            grid=grid,
            in_specs=[
                pl.BlockSpec((tm_eff, dim_p), lambda i, k: (i, 0)),   # x row tile
                pl.BlockSpec((dim_p, tk_eff), lambda i, k: (0, k)),   # w1 chunk
                pl.BlockSpec((1, tk_eff), lambda i, k: (0, k)),       # b1 chunk
                pl.BlockSpec((tk_eff, dim_p), lambda i, k: (k, 0)),   # w2 chunk
                pl.BlockSpec((1, dim_p), lambda i, k: (0, 0)),        # b2
            ],
            out_specs=pl.BlockSpec((tm_eff, dim_p), lambda i, k: (i, 0)),
            scratch_shapes=[pltpu.VMEM((tm_eff, dim_p), jnp.float32)],
        ),
        compiler_params=pltpu.CompilerParams(
            # Row axis shards across TCs (v7x megacore); hidden reduction axis is
            # last and "arbitrary" so the accumulator stays core-local.
            dimension_semantics=("parallel", "arbitrary"),
            vmem_limit_bytes=vmem_limit,
        ),
    )(x2d, w1p, b1p, w2p, b2p)

    return out2d[:rows, :dim].reshape(B, N, dim)


def mlp_forward(x, w1, b1, w2, b2, *, tm=512, tk=512,
                approximate_gelu=True, compute_dtype=None):
    """x: (B, N, dim) -> (B, N, dim). Weights stored as (in_features, out_features).

    approximate_gelu=False reproduces torch.nn.GELU()'s exact erf form;
    compute_dtype=jnp.bfloat16 pre-casts x/w1/w2 for the fast MXU path.
    """
    return _mlp_impl(x, w1, b1, w2, b2, tm=tm, tk=tk,
                     approximate_gelu=approximate_gelu,
                     compute_dtype=compute_dtype)


def init_mlp_params(key, dim, hidden_dim, dtype=jnp.float32):
    """Deterministic init mimicking torch.nn.Linear (uniform +/- 1/sqrt(fan_in))."""
    k1, k2, k3, k4 = jax.random.split(key, 4)
    bound1 = 1.0 / (dim ** 0.5)
    bound2 = 1.0 / (hidden_dim ** 0.5)
    w1 = jax.random.uniform(k1, (dim, hidden_dim), dtype, -bound1, bound1)
    b1 = jax.random.uniform(k2, (hidden_dim,), dtype, -bound1, bound1)
    w2 = jax.random.uniform(k3, (hidden_dim, dim), dtype, -bound2, bound2)
    b2 = jax.random.uniform(k4, (dim,), dtype, -bound2, bound2)
    return w1, b1, w2, b2


if __name__ == "__main__":
    # Small ViT-like shapes: batch=2, seq=8 tokens, dim=32, hidden=64.
    B, N, dim, hidden = 2, 8, 32, 64

    key = jax.random.PRNGKey(0)
    kx, kp = jax.random.split(key)
    x = jax.random.normal(kx, (B, N, dim), jnp.float32)
    w1, b1, w2, b2 = init_mlp_params(kp, dim, hidden)

    # Default (fast) path: tanh-approximate GELU.
    out = jax.block_until_ready(mlp_forward(x, w1, b1, w2, b2))
    ref = jax.nn.gelu(x @ w1 + b1, approximate=True) @ w2 + b2
    assert out.shape == (B, N, dim)
    assert jnp.allclose(out, ref, atol=1e-5, rtol=1e-5)

    # Exact-erf path (matches torch.nn.GELU() default semantics).
    out_exact = jax.block_until_ready(
        mlp_forward(x, w1, b1, w2, b2, approximate_gelu=False))
    ref_exact = jax.nn.gelu(x @ w1 + b1, approximate=False) @ w2 + b2
    assert jnp.allclose(out_exact, ref_exact, atol=1e-5, rtol=1e-5)

    print("KERNEL_OK")
</pallas_src>

<mosaic_0001>
module attributes {stable_mosaic.version = 11 : i64} {
  func.func @mlp_kernel(%arg0: i32, %arg1: i32, %arg2: memref<16x128xf32, #tpu.memory_space<vmem>>, %arg3: memref<128x128xf32, #tpu.memory_space<vmem>>, %arg4: memref<1x128xf32, #tpu.memory_space<vmem>>, %arg5: memref<128x128xf32, #tpu.memory_space<vmem>>, %arg6: memref<1x128xf32, #tpu.memory_space<vmem>>, %arg7: memref<16x128xf32, #tpu.memory_space<vmem>>, %arg8: memref<16x128xf32, #tpu.memory_space<vmem>>) attributes {dimension_semantics = [#tpu.dimension_semantics<parallel>, #tpu.dimension_semantics<arbitrary>], iteration_bounds = array<i64: 1, 1>, scalar_prefetch = 0 : i64, scratch_operands = 1 : i64, tpu.core_type = #tpu.core_type<tc>, window_params = [{transform_indices = @transform_0, window_bounds = array<i64: 16, 128>}, {transform_indices = @transform_1, window_bounds = array<i64: 128, 128>}, {transform_indices = @transform_2, window_bounds = array<i64: 1, 128>}, {transform_indices = @transform_3, window_bounds = array<i64: 128, 128>}, {pipeline_mode = #tpu.pipeline_mode<synchronous>, transform_indices = @transform_4, window_bounds = array<i64: 1, 128>}, {transform_indices = @transform_5, window_bounds = array<i64: 16, 128>}]} {
    %c0_i32 = arith.constant 0 : i32
    %0 = arith.cmpi eq, %arg1, %c0_i32 : i32
    %1 = arith.extui %0 : i1 to i32
    %c0_i32_0 = arith.constant 0 : i32
    %2 = arith.cmpi ne, %1, %c0_i32_0 : i32
    scf.if %2 {
      %cst_19 = arith.constant 0.000000e+00 : f32
      %30 = vector.broadcast %cst_19 : f32 to vector<16x128xf32>
      %c0_20 = arith.constant 0 : index
      %c0_21 = arith.constant 0 : index
      %31 = vector.load %arg8[%c0_20, %c0_21] : memref<16x128xf32, #tpu.memory_space<vmem>>, vector<16x128xf32>
      tpu.vector_store %arg8[%c0_20, %c0_21], %30 {strides = array<i32>} : memref<16x128xf32, #tpu.memory_space<vmem>>, vector<16x128xf32>,
    } else {
    }
    %c0 = arith.constant 0 : index
    %c0_1 = arith.constant 0 : index
    %3 = vector.load %arg2[%c0, %c0_1] : memref<16x128xf32, #tpu.memory_space<vmem>>, vector<16x128xf32>
    %c0_2 = arith.constant 0 : index
    %c0_3 = arith.constant 0 : index
    %4 = vector.load %arg3[%c0_2, %c0_3] : memref<128x128xf32, #tpu.memory_space<vmem>>, vector<128x128xf32>
    %cst = arith.constant dense<0.000000e+00> : vector<16x128xf32>
    %5 = tpu.matmul %3, %4, %cst {dimension_numbers = #tpu.dot_dimension_numbers<[1], [0], [0], [1], [0, 0, 1, 1], [], []>} : vector<16x128xf32>, vector<128x128xf32>, vector<16x128xf32> -> vector<16x128xf32>
    %c0_4 = arith.constant 0 : index
    %c0_5 = arith.constant 0 : index
    %6 = vector.load %arg4[%c0_4, %c0_5] : memref<1x128xf32, #tpu.memory_space<vmem>>, vector<1x128xf32>
    %7 = vector.broadcast %6 : vector<1x128xf32> to vector<16x128xf32>
    %8 = arith.addf %5, %7 : vector<16x128xf32>
    %9 = arith.mulf %8, %8 : vector<16x128xf32>
    %10 = arith.mulf %8, %9 : vector<16x128xf32>
    %cst_6 = arith.constant 4.471500e-02 : f32
    %11 = vector.broadcast %cst_6 : f32 to vector<16x128xf32>
    %12 = arith.mulf %11, %10 : vector<16x128xf32>
    %13 = arith.addf %8, %12 : vector<16x128xf32>
    %cst_7 = arith.constant 0.797884583 : f32
    %14 = vector.broadcast %cst_7 : f32 to vector<16x128xf32>
    %15 = arith.mulf %14, %13 : vector<16x128xf32>
    %16 = math.tanh %15 : vector<16x128xf32>
    %cst_8 = arith.constant 1.000000e+00 : f32
    %17 = vector.broadcast %cst_8 : f32 to vector<16x128xf32>
    %18 = arith.addf %17, %16 : vector<16x128xf32>
    %cst_9 = arith.constant 5.000000e-01 : f32
    %19 = vector.broadcast %cst_9 : f32 to vector<16x128xf32>
    %20 = arith.mulf %19, %18 : vector<16x128xf32>
    %21 = arith.mulf %8, %20 : vector<16x128xf32>
    %c0_10 = arith.constant 0 : index
    %c0_11 = arith.constant 0 : index
    %22 = vector.load %arg8[%c0_10, %c0_11] : memref<16x128xf32, #tpu.memory_space<vmem>>, vector<16x128xf32>
    %c0_12 = arith.constant 0 : index
    %c0_13 = arith.constant 0 : index
    %23 = vector.load %arg5[%c0_12, %c0_13] : memref<128x128xf32, #tpu.memory_space<vmem>>, vector<128x128xf32>
    %cst_14 = arith.constant dense<0.000000e+00> : vector<16x128xf32>
    %24 = tpu.matmul %21, %23, %cst_14 {dimension_numbers = #tpu.dot_dimension_numbers<[1], [0], [0], [1], [0, 0, 1, 1], [], []>} : vector<16x128xf32>, vector<128x128xf32>, vector<16x128xf32> -> vector<16x128xf32>
    %25 = arith.addf %22, %24 : vector<16x128xf32>
    %c0_15 = arith.constant 0 : index
    %c0_16 = arith.constant 0 : index
    %26 = vector.load %arg8[%c0_15, %c0_16] : memref<16x128xf32, #tpu.memory_space<vmem>>, vector<16x128xf32>
    tpu.vector_store %arg8[%c0_15, %c0_16], %25 {strides = array<i32>} : memref<16x128xf32, #tpu.memory_space<vmem>>, vector<16x128xf32>,
    %c0_i32_17 = arith.constant 0 : i32
    %27 = arith.cmpi eq, %arg1, %c0_i32_17 : i32
    %28 = arith.extui %27 : i1 to i32
    %c0_i32_18 = arith.constant 0 : i32
    %29 = arith.cmpi ne, %28, %c0_i32_18 : i32
    scf.if %29 {
      %c0_19 = arith.constant 0 : index
      %c0_20 = arith.constant 0 : index
      %30 = vector.load %arg8[%c0_19, %c0_20] : memref<16x128xf32, #tpu.memory_space<vmem>>, vector<16x128xf32>
      %c0_21 = arith.constant 0 : index
      %c0_22 = arith.constant 0 : index
      %31 = vector.load %arg6[%c0_21, %c0_22] : memref<1x128xf32, #tpu.memory_space<vmem>>, vector<1x128xf32>
      %32 = vector.broadcast %31 : vector<1x128xf32> to vector<16x128xf32>
      %33 = arith.addf %30, %32 : vector<16x128xf32>
      %c0_23 = arith.constant 0 : index
      %c0_24 = arith.constant 0 : index
      %34 = vector.load %arg7[%c0_23, %c0_24] : memref<16x128xf32, #tpu.memory_space<vmem>>, vector<16x128xf32>
      tpu.vector_store %arg7[%c0_23, %c0_24], %33 {strides = array<i32>} : memref<16x128xf32, #tpu.memory_space<vmem>>, vector<16x128xf32>,
    } else {
    }
    return
  }
  func.func @transform_0(%arg0: i32, %arg1: i32) -> (i32, i32) {
    %c0_i32 = arith.constant 0 : i32
    %c0_i32_0 = arith.constant 0 : i32
    return %arg0, %c0_i32 : i32, i32
  }
  func.func @transform_1(%arg0: i32, %arg1: i32) -> (i32, i32) {
    %c0_i32 = arith.constant 0 : i32
    %c0_i32_0 = arith.constant 0 : i32
    return %c0_i32, %arg1 : i32, i32
  }
  func.func @transform_2(%arg0: i32, %arg1: i32) -> (i32, i32) {
    %c0_i32 = arith.constant 0 : i32
    %c0_i32_0 = arith.constant 0 : i32
    return %c0_i32, %arg1 : i32, i32
  }
  func.func @transform_3(%arg0: i32, %arg1: i32) -> (i32, i32) {
    %c0_i32 = arith.constant 0 : i32
    %c0_i32_0 = arith.constant 0 : i32
    return %arg1, %c0_i32 : i32, i32
  }
  func.func @transform_4(%arg0: i32, %arg1: i32) -> (i32, i32) {
    %c0_i32 = arith.constant 0 : i32
    %c0_i32_0 = arith.constant 0 : i32
    %c0_i32_1 = arith.constant 0 : i32
    return %c0_i32, %c0_i32_0 : i32, i32
  }
  func.func @transform_5(%arg0: i32, %arg1: i32) -> (i32, i32) {
    %c0_i32 = arith.constant 0 : i32
    %c0_i32_0 = arith.constant 0 : i32
    return %arg0, %c0_i32 : i32, i32
  }
}

</mosaic_0001>

<bundles_post_ra>
// kernel: _mlp_impl.1
= control target key start
LH: loop header
LB: loop body
LE: loop exit
PB: predicated region body
PF: predicated region fallthrough
CT: control target
= control target key end

     0   :  { %s333_s1 = inlined_call_operand.vmem [shape: f32[128,128], index: 1, kind: input, shape index: {}]   ;;  %s334_s3 = inlined_call_operand.vmem [shape: f32[128,128], index: 3, kind: input, shape index: {}]   ;;  %s335_s2 = inlined_call_operand.vmem [shape: f32[1,128], index: 2, kind: input, shape index: {}]   ;;  %s336_s0 = inlined_call_operand.vmem [shape: f32[16,128], index: 0, kind: input, shape index: {}]   ;;  %s337_s4 = inlined_call_operand.vmem [shape: f32[1,128], index: 4, kind: input, shape index: {}]   ;;  %s338_s5 = inlined_call_operand.vmem [shape: f32[16,128], index: 5, kind: output, shape index: {}]  }
   0x1   :  { %v43_v0 = vld [vmem:[%s333_s1 + $0x78] sm:$0xff]  ;;  %v42_v1 = vld [vmem:[%s333_s1 + $0x70] sm:$0xff]  ;;  %v41_v2 = vld [vmem:[%s333_s1 + $0x68] sm:$0xff] }
   0x2   :  { %48 = vmatpush.msra.mxu0 %v43_v0  ;;  %151 = vmatpush.msra.mxu2 %v43_v0  ;;  %v40_v3 = vld [vmem:[%s333_s1 + $0x60] sm:$0xff]  ;;  %v39_v4 = vld [vmem:[%s333_s1 + $0x58] sm:$0xff]  ;;  %v105_v6 = vld [vmem:[%s334_s3 + $0x70] sm:$0xff] }
   0x3   :  { %v106_v5 = vld [vmem:[%s334_s3 + $0x78] sm:$0xff]  ;;  %v38_v7 = vld [vmem:[%s333_s1 + $0x50] sm:$0xff]  ;;  %v104_v8 = vld [vmem:[%s334_s3 + $0x68] sm:$0xff] }
   0x4   :  { %49 = vmatpush.msra.mxu0 %v42_v1  ;;  %152 = vmatpush.msra.mxu2 %v42_v1  ;;  %v37_v9 = vld [vmem:[%s333_s1 + $0x48] sm:$0xff]  ;;  %v36_v10 = vld [vmem:[%s333_s1 + $0x40] sm:$0xff]  ;;  %v35_v11 = vld [vmem:[%s333_s1 + $0x38] sm:$0xff] }
   0x5   :  { %107 = vmatpush.msra.mxu1 %v106_v5  ;;  %167 = vmatpush.msra.mxu3 %v106_v5  ;;  %v34_v12 = vld [vmem:[%s333_s1 + $0x30] sm:$0xff]  ;;  %v33_v13 = vld [vmem:[%s333_s1 + $0x28] sm:$0xff]  ;;  %v32_v14 = vld [vmem:[%s333_s1 + $0x20] sm:$0xff] }
   0x6   :  { %50 = vmatpush.msra.mxu0 %v41_v2  ;;  %153 = vmatpush.msra.mxu2 %v41_v2  ;;  %v31_v15 = vld [vmem:[%s333_s1 + $0x18] sm:$0xff]  ;;  %v30_v16 = vld [vmem:[%s333_s1 + $0x10] sm:$0xff]  ;;  %v29_v17 = vld [vmem:[%s333_s1 + $0x8] sm:$0xff] }
   0x7   :  { %108 = vmatpush.msra.mxu1 %v105_v6  ;;  %168 = vmatpush.msra.mxu3 %v105_v6  ;;  %v28_v18 = vld [vmem:[%s333_s1] sm:$0xff]  ;;  %v27_v20 = vld [vmem:[%s336_s0 + $0x8] sm:$0xff]  ;;  %v102_v22 = vld [vmem:[%s334_s3 + $0x58] sm:$0xff] }
   0x8   :  { %51 = vmatpush.msra.mxu0 %v40_v3  ;;  %154 = vmatpush.msra.mxu2 %v40_v3  ;;  %v26_v19 = vld [vmem:[%s336_s0] sm:$0xff]  ;;  %v101_v23 = vld [vmem:[%s334_s3 + $0x50] sm:$0xff]  ;;  %v100_v24 = vld [vmem:[%s334_s3 + $0x48] sm:$0xff] }
   0x9   :  { %109 = vmatpush.msra.mxu1 %v104_v8  ;;  %169 = vmatpush.msra.mxu3 %v104_v8  ;;  %v103_v21 = vld [vmem:[%s334_s3 + $0x60] sm:$0xff]  ;;  %v98_v26 = vld [vmem:[%s334_s3 + $0x38] sm:$0xff]  ;;  %v97_v27 = vld [vmem:[%s334_s3 + $0x30] sm:$0xff] }
   0xa   :  { %52 = vmatpush.msra.mxu0 %v39_v4  ;;  %155 = vmatpush.msra.mxu2 %v39_v4  ;;  %v99_v25 = vld [vmem:[%s334_s3 + $0x40] sm:$0xff]  ;;  %v96_v28 = vld [vmem:[%s334_s3 + $0x28] sm:$0xff]  ;;  %v94_v30 = vld [vmem:[%s334_s3 + $0x18] sm:$0xff] }
   0xb   :  { %110 = vmatpush.msra.mxu1 %v103_v21  ;;  %170 = vmatpush.msra.mxu3 %v103_v21  ;;  %v95_v29 = vld [vmem:[%s334_s3 + $0x20] sm:$0xff]  ;;  %v93_v31 = vld [vmem:[%s334_s3 + $0x10] sm:$0xff]  ;;  %v92_v32 = vld [vmem:[%s334_s3 + $0x8] sm:$0xff] }
   0xc   :  { %53 = vmatpush.msra.mxu0 %v38_v7  ;;  %156 = vmatpush.msra.mxu2 %v38_v7  ;;  %v91_v33 = vld [vmem:[%s334_s3] sm:$0xff] }
   0xd   :  { %111 = vmatpush.msra.mxu1 %v102_v22  ;;  %171 = vmatpush.msra.mxu3 %v102_v22  ;;  %v183_v34 = vld [vmem:[%s335_s2] ss:$0 sm:$0xff] }
   0xe   :  { %54 = vmatpush.msra.mxu0 %v37_v9  ;;  %157 = vmatpush.msra.mxu2 %v37_v9  ;;  %v184_v57 = vld [vmem:[%s337_s4] ss:$0 sm:$0xff] }
   0xf   :  { %112 = vmatpush.msra.mxu1 %v101_v23  ;;  %172 = vmatpush.msra.mxu3 %v101_v23 }
  0x10   :  { %55 = vmatpush.msra.mxu0 %v36_v10  ;;  %158 = vmatpush.msra.mxu2 %v36_v10 }
  0x11   :  { %113 = vmatpush.msra.mxu1 %v100_v24  ;;  %173 = vmatpush.msra.mxu3 %v100_v24 }
  0x12   :  { %56 = vmatpush.msra.mxu0 %v35_v11  ;;  %159 = vmatpush.msra.mxu2 %v35_v11 }
  0x13   :  { %114 = vmatpush.msra.mxu1 %v99_v25  ;;  %174 = vmatpush.msra.mxu3 %v99_v25 }
  0x14   :  { %57 = vmatpush.msra.mxu0 %v34_v12  ;;  %160 = vmatpush.msra.mxu2 %v34_v12 }
  0x15   :  { %115 = vmatpush.msra.mxu1 %v98_v26  ;;  %175 = vmatpush.msra.mxu3 %v98_v26 }
  0x16   :  { %58 = vmatpush.msra.mxu0 %v33_v13  ;;  %161 = vmatpush.msra.mxu2 %v33_v13 }
  0x17   :  { %116 = vmatpush.msra.mxu1 %v97_v27  ;;  %176 = vmatpush.msra.mxu3 %v97_v27 }
  0x18   :  { %59 = vmatpush.msra.mxu0 %v32_v14  ;;  %162 = vmatpush.msra.mxu2 %v32_v14 }
  0x19   :  { %117 = vmatpush.msra.mxu1 %v96_v28  ;;  %177 = vmatpush.msra.mxu3 %v96_v28 }
  0x1a   :  { %60 = vmatpush.msra.mxu0 %v31_v15  ;;  %163 = vmatpush.msra.mxu2 %v31_v15 }
  0x1b   :  { %118 = vmatpush.msra.mxu1 %v95_v29  ;;  %178 = vmatpush.msra.mxu3 %v95_v29 }
  0x1c   :  { %61 = vmatpush.msra.mxu0 %v30_v16  ;;  %164 = vmatpush.msra.mxu2 %v30_v16 }
  0x1d   :  { %119 = vmatpush.msra.mxu1 %v94_v30  ;;  %179 = vmatpush.msra.mxu3 %v94_v30 }
  0x1e   :  { %62 = vmatpush.msra.mxu0 %v29_v17  ;;  %165 = vmatpush.msra.mxu2 %v29_v17 }
  0x1f   :  { %120 = vmatpush.msra.mxu1 %v93_v31  ;;  %180 = vmatpush.msra.mxu3 %v93_v31 }
  0x20   :  { %63 = vmatpush.msra.mxu0 %v28_v18  ;;  %166 = vmatpush.msra.mxu2 %v28_v18 }
  0x21   :  { %64 = vmatmul.f32.vlgmr.msra.gmra.mxu0 %v26_v19  ;;  %67 = vmatmul.f32.vlgmr.msra.gmra.mxu2 %v27_v20 }
  0x22   :  { %121 = vmatpush.msra.mxu1 %v92_v32  ;;  %181 = vmatpush.msra.mxu3 %v92_v32 }
  0x24   :  { %122 = vmatpush.msra.mxu1 %v91_v33  ;;  %182 = vmatpush.msra.mxu3 %v91_v33 }
  0x9e   :  { %v65_v35 = vpop.f32.mrf.mxu0 }
  0x9f   :  { %v66_v36 = vadd.f32 %v183_v34, %v65_v35 }
  0xa1   :  { %v71_v37 = vmul.f32 %v66_v36, %v66_v36 }
  0xa3   :  { %v73_v38 = vmul.f32 %v71_v37, %v66_v36 }
  0xa4   :  { %v68_v39 = vpop.f32.mrf.mxu2 }
  0xa5   :  { %v69_v40 = vadd.f32 %v183_v34, %v68_v39  ;;  %v75_v41 = vmul.f32 0.044715, %v73_v38 }
  0xa7   :  { %v72_v42 = vmul.f32 %v69_v40, %v69_v40  ;;  %v77_v43 = vadd.f32 %v75_v41, %v66_v36 }
  0xa9   :  { %v74_v44 = vmul.f32 %v72_v42, %v69_v40  ;;  %v79_v45 = vmul.f32 0.7978846, %v77_v43 }
  0xab   :  { %185 = vtanh.f32 %v79_v45  ;;  %v76_v46 = vmul.f32 0.044715, %v74_v44 }
  0xad   :  { %v78_v47 = vadd.f32 %v76_v46, %v69_v40 }
  0xaf   :  { %v80_v48 = vmul.f32 0.7978846, %v78_v47 }
  0xb1   :  { %v186_v49 = vpop.eup %185  ;;  %187 = vtanh.f32 %v80_v48 }
  0xb2   :  { %v83_v50 = vadd.f32 1.0, %v186_v49 }
  0xb4   :  { %v85_v51 = vmul.f32 0.5, %v83_v50 }
  0xb6   :  { %v87_v52 = vmul.f32 %v85_v51, %v66_v36 }
  0xb7   :  { %v188_v53 = vpop.eup %187 }
  0xb8   :  { %123 = vmatmul.f32.vlgmr.msra.gmra.mxu1 %v87_v52  ;;  %v84_v54 = vadd.f32 1.0, %v188_v53 }
  0xba   :  { %v86_v55 = vmul.f32 0.5, %v84_v54 }
  0xbc   :  { %v88_v56 = vmul.f32 %v86_v55, %v69_v40 }
  0xbe   :  { %126 = vmatmul.f32.vlgmr.msra.gmra.mxu3 %v88_v56 }
 0x135   :  { %v124_v58 = vpop.f32.mrf.mxu1 }
 0x136   :  { %v143_v59 = vadd.f32 %v184_v57, %v124_v58 }
 0x138   :  { %145 = vst [vmem:[%s338_s5] sm:$0xff] %v143_v59 }
 0x141   :  { %v127_v60 = vpop.f32.mrf.mxu3 }
 0x142   :  { %v144_v61 = vadd.f32 %v184_v57, %v127_v60 }
 0x144   :  { %146 = vst [vmem:[%s338_s5 + $0x8] sm:$0xff] %v144_v61 }

</bundles_post_ra>
